<compile_context>
chip_gen: v7x
topology: tpu7x:2x2x1
jax: 0.10.0
libtpu: 0.0.40
codegen_flags: <defaults>
</compile_context>

<pallas_src>
import numpy as np
import jax
import jax.numpy as jnp
from jax.experimental import pallas as pl
from jax.experimental.pallas import tpu as pltpu

# ----- GriffinLim(n_fft, win_length, hop_length, n_iter) config (small) -----
N_FFT = 16
WIN_LENGTH = 16
HOP = 4
N_ITER = 2
F_BINS = N_FFT // 2 + 1                  # 9  frequency bins
T_FRAMES = 8                             # spectrogram frames
L_OUT = HOP * (T_FRAMES - 1)             # 28 output waveform samples
N_FULL = N_FFT + HOP * (T_FRAMES - 1)    # 44 untrimmed waveform length
HALF = N_FFT // 2                        # 8
TINY = 1.1754944e-38

LANE = 128                               # lane-dense padded width
TF = T_FRAMES * F_BINS                   # 72 spectrogram coefficients / batch


# --------------------- deterministic parameter setup (numpy) ----------------
def _hann_window_periodic(m):
    n = np.arange(m)
    return 0.5 - 0.5 * np.cos(2.0 * np.pi * n / m)


def _get_window(n_fft, win_length):
    pad = n_fft - win_length
    w = _hann_window_periodic(win_length)
    return np.pad(w, (pad // 2, pad - pad // 2)).astype(np.float32)


def _get_fourier_basis(n_fft):
    basis = np.fft.fft(np.eye(n_fft))
    cutoff = n_fft // 2 + 1
    return np.vstack(
        [np.real(basis[:cutoff]), np.imag(basis[:cutoff])]
    ).astype(np.float32)                                    # (2F, n_fft)


_WINDOW = _get_window(N_FFT, WIN_LENGTH)                     # (n_fft,)
_FB = _get_fourier_basis(N_FFT)                              # (2F, n_fft)

# forward STFT basis (TTSSpectrogram conv1d weights): fourier basis * window
_BASIS_FWD = _FB * _WINDOW[None, :]                          # (2F, n_fft)

# inverse basis: pinverse(n_fft/hop * fourier_basis).T * window
_BASIS_INV = (np.linalg.pinv((N_FFT / HOP) * _FB).T * _WINDOW[None, :]).astype(
    np.float32
)                                                            # (2F, n_fft)

# window sum-square (get_window_sum_square) folded with the `> tiny` masked
# division and the final *= n_fft/hop scaling.
_wsq = _WINDOW ** 2
_WSS = np.zeros(N_FULL, np.float32)
for _i in range(T_FRAMES):
    _ofst = _i * HOP
    _WSS[_ofst:min(N_FULL, _ofst + N_FFT)] += _wsq[: max(0, min(N_FFT, N_FULL - _ofst))]
_SCALE = (np.where(_WSS > TINY, 1.0 / np.where(_WSS > TINY, _WSS, 1.0), 1.0)
          * (N_FFT / HOP)).astype(np.float32)                # (N_FULL,)


def _src_index(j):
    """wave_full index feeding padded sample j of the forward STFT.

    Folds: trim wave_full[HALF:HALF+L_OUT]  ->  reflect-pad by HALF each side.
    """
    p = j - HALF
    if p < 0:
        p = -p
    elif p >= L_OUT:
        p = 2 * (L_OUT - 1) - p
    return HALF + p


# FWD_MAT: wave_full(44, padded to 128) -> [re || im] STFT coeffs, column
# layout col = t*F + f for re (cols [0,128)), LANE + t*F + f for im.
FWD_MAT = np.zeros((LANE, 2 * LANE), np.float32)
for _t in range(T_FRAMES):
    for _k in range(N_FFT):
        _n = _src_index(_t * HOP + _k)
        for _f in range(F_BINS):
            _col = _t * F_BINS + _f
            FWD_MAT[_n, _col] += _BASIS_FWD[_f, _k]                 # real part
            FWD_MAT[_n, LANE + _col] += _BASIS_FWD[F_BINS + _f, _k]  # imag part

# INV_CAT = vstack(INV_RE, INV_IM): conv_transpose1d(stride=hop) + overlap-add
# as one block-Toeplitz matrix, with the window-sum-square division and the
# n_fft/hop scale folded into the output columns.  Row layout:
#   rows [0,128)      = real rows (t*F + f)   <- sr columns of [sr || si]
#   rows [128,256)    = imag rows (t*F + f)   <- si columns of [sr || si]
INV_CAT = np.zeros((2 * LANE, LANE), np.float32)
for _t in range(T_FRAMES):
    for _f in range(F_BINS):
        _row = _t * F_BINS + _f
        for _k in range(N_FFT):
            _n = _t * HOP + _k
            INV_CAT[_row, _n] += _BASIS_INV[_f, _k] * _SCALE[_n]
            INV_CAT[LANE + _row, _n] += _BASIS_INV[F_BINS + _f, _k] * _SCALE[_n]


# ------------------------------- fused Pallas kernel -------------------------
def griffin_lim_kernel(mag_ref, ang_ref, fwd_ref, inv_ref, out_ref):
    """All N_ITER Griffin-Lim iterations; waveform state stays in vregs/VMEM.

    mag_ref/ang_ref: (TB, 128) f32  [cols t*F+f used, rest zero]
    fwd_ref: (128, 256) bf16   wave -> [re || im] STFT coeffs
    inv_ref: (256, 128) bf16   [sr || si] -> untrimmed waveform (scale folded)
    out_ref: (TB, 128) f32     [cols 0..N_FULL-1 = untrimmed waveform]
    """
    mag = mag_ref[...]
    ang = ang_ref[...]
    fwd = fwd_ref[...]
    inv = inv_ref[...]

    # hoisted loop-invariant wide tensors (JAX does not CSE broadcasts)
    mag2 = jnp.concatenate([mag, mag], axis=-1)                      # (TB,256)
    one_zero = jnp.concatenate(
        [jnp.ones_like(mag), jnp.zeros_like(mag)], axis=-1)          # atan2(0,0) fallback

    # initial inverse from random phases: [mag*cos || mag*sin] @ INV_CAT
    sri = jnp.concatenate([mag * jnp.cos(ang), mag * jnp.sin(ang)], axis=-1)
    wave = jnp.dot(sri.astype(jnp.bfloat16), inv,
                   preferred_element_type=jnp.float32)               # (TB,128)

    for _ in range(N_ITER):  # static unroll, N_ITER is tiny
        # forward STFT of current waveform (trim+reflect+frame+basis fused)
        ri = jnp.dot(wave.astype(jnp.bfloat16), fwd,
                     preferred_element_type=jnp.float32)             # (TB,256) = [re||im]
        re = ri[:, :LANE]
        im = ri[:, LANE:]
        # phase renorm (f32 on VPU/EUP): cos = re/|z|, sin = im/|z|,
        # atan2(0,0) -> (1, 0); rsqrt input guarded by the library tiny.
        denom = re * re + im * im
        nz = denom > TINY
        invd = jax.lax.rsqrt(jnp.where(nz, denom, 1.0))
        unit = jnp.where(jnp.concatenate([nz, nz], axis=-1),
                         ri * jnp.concatenate([invd, invd], axis=-1),
                         one_zero)
        # single fused inverse: [sr || si] @ INV_CAT  (one K=256 MXU matmul)
        wave = jnp.dot((mag2 * unit).astype(jnp.bfloat16), inv,
                       preferred_element_type=jnp.float32)

    out_ref[...] = wave


# ------------------------------ pallas_call glue ------------------------------
def _round_up(x, m):
    return -(-x // m) * m


def _choose_tb(batch):
    """Rows per grid step: big blocks amortize per-step overhead, but keep
    >= 2 parallel blocks when there is enough work (v7x has 2 TensorCores)."""
    b8 = _round_up(max(batch, 1), 8)
    n_blocks = max(1, -(-b8 // 512))          # cap rows-per-step at 512
    if n_blocks == 1 and b8 >= 16:
        n_blocks = 2                          # feed both TCs on v7x
    return _round_up(-(-b8 // n_blocks), 8)


def _make_call(n_blocks, tb):
    return pl.pallas_call(
        griffin_lim_kernel,
        out_shape=jax.ShapeDtypeStruct((n_blocks * tb, LANE), jnp.float32),
        grid_spec=pltpu.PrefetchScalarGridSpec(
            num_scalar_prefetch=0,
            grid=(n_blocks,),
            in_specs=[
                pl.BlockSpec((tb, LANE), lambda b: (b, 0)),          # mag
                pl.BlockSpec((tb, LANE), lambda b: (b, 0)),          # angles
                pl.BlockSpec((LANE, 2 * LANE), lambda b: (0, 0),     # FWD (grid-invariant)
                             pipeline_mode=pl.Buffered(1)),
                pl.BlockSpec((2 * LANE, LANE), lambda b: (0, 0),     # INV_CAT (grid-invariant)
                             pipeline_mode=pl.Buffered(1)),
            ],
            out_specs=pl.BlockSpec((tb, LANE), lambda b: (b, 0)),
        ),
        compiler_params=pltpu.CompilerParams(
            dimension_semantics=("parallel",)),   # batch blocks are independent
    )


def griffin_lim(specgram, phase_key):
    """specgram: (..., F, T) magnitude spectrogram (PyTorch layout).

    Returns (L_OUT,) for a single spectrogram, (B, L_OUT) otherwise.
    """
    assert specgram.shape[-2:] == (F_BINS, T_FRAMES), specgram.shape
    mag_bft = specgram.reshape(-1, F_BINS, T_FRAMES).astype(jnp.float32)
    batch = mag_bft.shape[0]
    # (B, F, T) -> (B, T, F) -> flat (B, T*F) matching the kernel column layout
    mag_flat = jnp.transpose(mag_bft, (0, 2, 1)).reshape(batch, TF)

    # initial random phases; mag*cos / mag*sin happen INSIDE the kernel.
    # TODO(synk): reference uses the np.random global stream (np.angle(exp(2j*pi*rand)));
    # replaced with jax.random uniform(-pi, pi) — same distribution, not bit-identical.
    angles = jax.random.uniform(phase_key, (batch, TF), jnp.float32,
                                minval=-np.pi, maxval=np.pi)

    tb = _choose_tb(batch)
    b_pad = _round_up(batch, tb)
    n_blocks = b_pad // tb

    def _pad(x):  # zero-pad batch rows and lanes to (b_pad, 128)
        return jnp.pad(x, ((0, b_pad - batch), (0, LANE - TF)))

    wave_full = _make_call(n_blocks, tb)(
        _pad(mag_flat), _pad(angles),
        jnp.asarray(FWD_MAT).astype(jnp.bfloat16),
        jnp.asarray(INV_CAT).astype(jnp.bfloat16))

    # final trim stays OUTSIDE the kernel so the kernel output is lane-dense
    wave = wave_full[:batch, HALF:HALF + L_OUT]
    return wave[0] if batch == 1 else wave


if __name__ == "__main__":
    key = jax.random.PRNGKey(0)
    k_spec, k_phase = jax.random.split(key)
    # magnitude spectrogram batch, PyTorch layout (B, F, T)
    specgram = jax.random.uniform(k_spec, (2, F_BINS, T_FRAMES), dtype=jnp.float32)

    out = jax.jit(lambda s: griffin_lim(s, k_phase))(specgram)
    out = jax.block_until_ready(out)

    assert out.shape == (2, L_OUT), out.shape
    assert bool(jnp.all(jnp.isfinite(out)))
    print("KERNEL_OK")
</pallas_src>

<mosaic_0001>
module attributes {stable_mosaic.version = 11 : i64} {
  func.func @griffin_lim_kernel(%arg0: i32, %arg1: memref<8x128xf32, #tpu.memory_space<vmem>>, %arg2: memref<8x128xf32, #tpu.memory_space<vmem>>, %arg3: memref<128x256xbf16, #tpu.memory_space<vmem>>, %arg4: memref<256x128xbf16, #tpu.memory_space<vmem>>, %arg5: memref<8x128xf32, #tpu.memory_space<vmem>>) attributes {dimension_semantics = [#tpu.dimension_semantics<parallel>], iteration_bounds = array<i64: 1>, scalar_prefetch = 0 : i64, scratch_operands = 0 : i64, tpu.core_type = #tpu.core_type<tc>, window_params = [{transform_indices = @transform_0, window_bounds = array<i64: 8, 128>}, {transform_indices = @transform_1, window_bounds = array<i64: 8, 128>}, {pipeline_mode = #tpu.pipeline_mode<synchronous>, transform_indices = @transform_2, window_bounds = array<i64: 128, 256>}, {pipeline_mode = #tpu.pipeline_mode<synchronous>, transform_indices = @transform_3, window_bounds = array<i64: 256, 128>}, {transform_indices = @transform_4, window_bounds = array<i64: 8, 128>}]} {
    %c0 = arith.constant 0 : index
    %c0_0 = arith.constant 0 : index
    %0 = vector.load %arg1[%c0, %c0_0] : memref<8x128xf32, #tpu.memory_space<vmem>>, vector<8x128xf32>
    %c0_1 = arith.constant 0 : index
    %c0_2 = arith.constant 0 : index
    %1 = vector.load %arg2[%c0_1, %c0_2] : memref<8x128xf32, #tpu.memory_space<vmem>>, vector<8x128xf32>
    %c0_3 = arith.constant 0 : index
    %c0_4 = arith.constant 0 : index
    %2 = vector.load %arg3[%c0_3, %c0_4] : memref<128x256xbf16, #tpu.memory_space<vmem>>, vector<128x256xbf16>
    %c0_5 = arith.constant 0 : index
    %c0_6 = arith.constant 0 : index
    %3 = vector.load %arg4[%c0_5, %c0_6] : memref<256x128xbf16, #tpu.memory_space<vmem>>, vector<256x128xbf16>
    %4 = tpu.concatenate %0, %0 in 1 : vector<8x128xf32>, vector<8x128xf32> -> vector<8x256xf32>
    %cst = arith.constant 1.000000e+00 : f32
    %5 = vector.broadcast %cst : f32 to vector<8x128xf32>
    %cst_7 = arith.constant 0.000000e+00 : f32
    %6 = vector.broadcast %cst_7 : f32 to vector<8x128xf32>
    %7 = tpu.concatenate %5, %6 in 1 : vector<8x128xf32>, vector<8x128xf32> -> vector<8x256xf32>
    %8 = math.cos %1 : vector<8x128xf32>
    %9 = arith.mulf %0, %8 : vector<8x128xf32>
    %10 = math.sin %1 : vector<8x128xf32>
    %11 = arith.mulf %0, %10 : vector<8x128xf32>
    %12 = tpu.concatenate %9, %11 in 1 : vector<8x128xf32>, vector<8x128xf32> -> vector<8x256xf32>
    %13 = arith.truncf %12 : vector<8x256xf32> to vector<8x256xbf16>
    %cst_8 = arith.constant dense<0.000000e+00> : vector<8x128xf32>
    %14 = tpu.matmul %13, %3, %cst_8 {dimension_numbers = #tpu.dot_dimension_numbers<[1], [0], [0], [1], [0, 0, 1, 1], [], []>} : vector<8x256xbf16>, vector<256x128xbf16>, vector<8x128xf32> -> vector<8x128xf32>
    %15 = arith.truncf %14 : vector<8x128xf32> to vector<8x128xbf16>
    %cst_9 = arith.constant dense<0.000000e+00> : vector<8x256xf32>
    %16 = tpu.matmul %15, %2, %cst_9 {dimension_numbers = #tpu.dot_dimension_numbers<[1], [0], [0], [1], [0, 0, 1, 1], [], []>} : vector<8x128xbf16>, vector<128x256xbf16>, vector<8x256xf32> -> vector<8x256xf32>
    %17 = vector.extract_strided_slice %16 {offsets = [0, 0], sizes = [8, 128], strides = [1, 1]} : vector<8x256xf32> to vector<8x128xf32>
    %18 = vector.extract_strided_slice %16 {offsets = [0, 128], sizes = [8, 128], strides = [1, 1]} : vector<8x256xf32> to vector<8x128xf32>
    %19 = arith.mulf %17, %17 : vector<8x128xf32>
    %20 = arith.mulf %18, %18 : vector<8x128xf32>
    %21 = arith.addf %19, %20 : vector<8x128xf32>
    %cst_10 = arith.constant 1.17549435E-38 : f32
    %22 = vector.broadcast %cst_10 : f32 to vector<8x128xf32>
    %23 = arith.cmpf ogt, %21, %22 : vector<8x128xf32>
    %cst_11 = arith.constant 1.000000e+00 : f32
    %24 = vector.broadcast %cst_11 : f32 to vector<8x128xf32>
    %25 = arith.select %23, %21, %24 : vector<8x128xi1>, vector<8x128xf32>
    %26 = math.rsqrt %25 : vector<8x128xf32>
    %27 = tpu.concatenate %23, %23 in 1 : vector<8x128xi1>, vector<8x128xi1> -> vector<8x256xi1>
    %28 = tpu.concatenate %26, %26 in 1 : vector<8x128xf32>, vector<8x128xf32> -> vector<8x256xf32>
    %29 = arith.mulf %16, %28 : vector<8x256xf32>
    %30 = arith.select %27, %29, %7 : vector<8x256xi1>, vector<8x256xf32>
    %31 = arith.mulf %4, %30 : vector<8x256xf32>
    %32 = arith.truncf %31 : vector<8x256xf32> to vector<8x256xbf16>
    %cst_12 = arith.constant dense<0.000000e+00> : vector<8x128xf32>
    %33 = tpu.matmul %32, %3, %cst_12 {dimension_numbers = #tpu.dot_dimension_numbers<[1], [0], [0], [1], [0, 0, 1, 1], [], []>} : vector<8x256xbf16>, vector<256x128xbf16>, vector<8x128xf32> -> vector<8x128xf32>
    %34 = arith.truncf %33 : vector<8x128xf32> to vector<8x128xbf16>
    %cst_13 = arith.constant dense<0.000000e+00> : vector<8x256xf32>
    %35 = tpu.matmul %34, %2, %cst_13 {dimension_numbers = #tpu.dot_dimension_numbers<[1], [0], [0], [1], [0, 0, 1, 1], [], []>} : vector<8x128xbf16>, vector<128x256xbf16>, vector<8x256xf32> -> vector<8x256xf32>
    %36 = vector.extract_strided_slice %35 {offsets = [0, 0], sizes = [8, 128], strides = [1, 1]} : vector<8x256xf32> to vector<8x128xf32>
    %37 = vector.extract_strided_slice %35 {offsets = [0, 128], sizes = [8, 128], strides = [1, 1]} : vector<8x256xf32> to vector<8x128xf32>
    %38 = arith.mulf %36, %36 : vector<8x128xf32>
    %39 = arith.mulf %37, %37 : vector<8x128xf32>
    %40 = arith.addf %38, %39 : vector<8x128xf32>
    %cst_14 = arith.constant 1.17549435E-38 : f32
    %41 = vector.broadcast %cst_14 : f32 to vector<8x128xf32>
    %42 = arith.cmpf ogt, %40, %41 : vector<8x128xf32>
    %cst_15 = arith.constant 1.000000e+00 : f32
    %43 = vector.broadcast %cst_15 : f32 to vector<8x128xf32>
    %44 = arith.select %42, %40, %43 : vector<8x128xi1>, vector<8x128xf32>
    %45 = math.rsqrt %44 : vector<8x128xf32>
    %46 = tpu.concatenate %42, %42 in 1 : vector<8x128xi1>, vector<8x128xi1> -> vector<8x256xi1>
    %47 = tpu.concatenate %45, %45 in 1 : vector<8x128xf32>, vector<8x128xf32> -> vector<8x256xf32>
    %48 = arith.mulf %35, %47 : vector<8x256xf32>
    %49 = arith.select %46, %48, %7 : vector<8x256xi1>, vector<8x256xf32>
    %50 = arith.mulf %4, %49 : vector<8x256xf32>
    %51 = arith.truncf %50 : vector<8x256xf32> to vector<8x256xbf16>
    %cst_16 = arith.constant dense<0.000000e+00> : vector<8x128xf32>
    %52 = tpu.matmul %51, %3, %cst_16 {dimension_numbers = #tpu.dot_dimension_numbers<[1], [0], [0], [1], [0, 0, 1, 1], [], []>} : vector<8x256xbf16>, vector<256x128xbf16>, vector<8x128xf32> -> vector<8x128xf32>
    %c0_17 = arith.constant 0 : index
    %c0_18 = arith.constant 0 : index
    %53 = vector.load %arg5[%c0_17, %c0_18] : memref<8x128xf32, #tpu.memory_space<vmem>>, vector<8x128xf32>
    tpu.vector_store %arg5[%c0_17, %c0_18], %52 {strides = array<i32>} : memref<8x128xf32, #tpu.memory_space<vmem>>, vector<8x128xf32>,
    return
  }
  func.func @transform_0(%arg0: i32) -> (i32, i32) {
    %c0_i32 = arith.constant 0 : i32
    %c0_i32_0 = arith.constant 0 : i32
    return %arg0, %c0_i32 : i32, i32
  }
  func.func @transform_1(%arg0: i32) -> (i32, i32) {
    %c0_i32 = arith.constant 0 : i32
    %c0_i32_0 = arith.constant 0 : i32
    return %arg0, %c0_i32 : i32, i32
  }
  func.func @transform_2(%arg0: i32) -> (i32, i32) {
    %c0_i32 = arith.constant 0 : i32
    %c0_i32_0 = arith.constant 0 : i32
    %c0_i32_1 = arith.constant 0 : i32
    return %c0_i32, %c0_i32_0 : i32, i32
  }
  func.func @transform_3(%arg0: i32) -> (i32, i32) {
    %c0_i32 = arith.constant 0 : i32
    %c0_i32_0 = arith.constant 0 : i32
    %c0_i32_1 = arith.constant 0 : i32
    return %c0_i32, %c0_i32_0 : i32, i32
  }
  func.func @transform_4(%arg0: i32) -> (i32, i32) {
    %c0_i32 = arith.constant 0 : i32
    %c0_i32_0 = arith.constant 0 : i32
    return %arg0, %c0_i32 : i32, i32
  }
}

</mosaic_0001>

<bundles_post_ra>
// kernel: _lambda_.1
= control target key start
LH: loop header
LB: loop body
LE: loop exit
PB: predicated region body
PF: predicated region fallthrough
CT: control target
= control target key end

     0   :  { %v857_v35 = vmov 683565275   ;;  %v858_v37 = vmov 2475754826   ;;  %v859_v39 = vmov 2131351028   ;;  %s1165_s3 = inlined_call_operand.vmem [shape: bf16[256,128], index: 3, kind: input, shape index: {}]   ;;  %s1166_s1 = inlined_call_operand.vmem [shape: f32[8,128], index: 1, kind: input, shape index: {}]   ;;  %s1167_s2 = inlined_call_operand.vmem [shape: bf16[128,256], index: 2, kind: input, shape index: {}]   ;;  %s1168_s0 = inlined_call_operand.vmem [shape: f32[8,128], index: 0, kind: input, shape index: {}]   ;;  %s1169_s4 = inlined_call_operand.vmem [shape: f32[8,128], index: 4, kind: output, shape index: {}]  }
   0x1   :  { %v892_v0 = vld [vmem:[%s1165_s3 + $0x40] sm:$0xff]   ;;  %v903_v2 = vld [vmem:[%s1165_s3 + $0x48] sm:$0xff]   ;;  %v915_v4 = vld [vmem:[%s1165_s3 + $0x50] sm:$0xff]   ;;  %v860_v41 = vmov 2102212464  }
   0x2   :  { %v897_v1 = vld [vmem:[%s1165_s3] sm:$0xff]   ;;  %732 = vmatprep.subr.bf16.mxu0 %v892_v0  ;;  %v909_v3 = vld [vmem:[%s1165_s3 + $0x8] sm:$0xff]   ;;  %v921_v5 = vld [vmem:[%s1165_s3 + $0x10] sm:$0xff]   ;;  %v861_v43 = vmov 920167782  }
   0x3   :  { %733 = vmatpush3.bf16.msra.mxu0 %v897_v1  ;;  %v927_v6 = vld [vmem:[%s1165_s3 + $0x58] sm:$0xff]   ;;  %v939_v8 = vld [vmem:[%s1165_s3 + $0x60] sm:$0xff]   ;;  %v951_v10 = vld [vmem:[%s1165_s3 + $0x68] sm:$0xff]   ;;  %v862_v52 = vmov 1326507024  }
   0x4   :  { %734 = vmatprep.subr.bf16.mxu0 %v903_v2  ;;  %v933_v7 = vld [vmem:[%s1165_s3 + $0x18] sm:$0xff]   ;;  %v945_v9 = vld [vmem:[%s1165_s3 + $0x20] sm:$0xff]   ;;  %v968_v14 = vld [vmem:[%s1165_s3 + $0x28] sm:$0xff]  }
   0x5   :  { %v956_v11 = vld [vmem:[%s1166_s1] sm:$0xff]  ;;  %v973_v15 = vld [vmem:[%s1165_s3 + $0x70] sm:$0xff]   ;;  %v1010_v25 = vld [vmem:[%s1165_s3 + $0x78] sm:$0xff]  }
   0x6   :  { %v71_v12 = vand.u32 2139095040, %v956_v11  ;;  %v962_v13 = vld [vmem:[%s1167_s2 + $0x4] ss:$8 sps:$4 sm:$0xff]   ;;  %v68_v16 = vand.u32 2147483647, %v956_v11  ;;  %v991_v21 = vld [vmem:[%s1165_s3 + $0x30] sm:$0xff]   ;;  %vm160_vm15 = vweird.f32 %v956_v11 }
   0x7   :  { %735 = vmatpush3.bf16.msra.mxu0 %v909_v3  ;;  %496 = vmatprep.subr.bf16.mxu1 %v962_v13  ;;  %v981_v18 = vld [vmem:[%s1167_s2] ss:$8 sps:$4 sm:$0xff]   ;;  %v986_v19 = vld [vmem:[%s1167_s2 + $0x14] ss:$8 sps:$4 sm:$0xff]   ;;  %v997_v22 = vld [vmem:[%s1167_s2 + $0x10] ss:$8 sps:$4 sm:$0xff]  }
   0x8   :  { %736 = vmatprep.subr.bf16.mxu0 %v915_v4  ;;  %v72_v17 = vshrl.u32 %v71_v12, 23  ;;  %497 = vmatpush1.bf16.msra.mxu1 %v981_v18  ;;  %v1004_v24 = vld [vmem:[%s1167_s2 + $0x24] ss:$8 sps:$4 sm:$0xff]   ;;  %v75_v26 = vand.u32 8388607, %v68_v16  ;;  %v1024_v29 = vld [vmem:[%s1165_s3 + $0x38] sm:$0xff]  }
   0x9   :  { %498 = vmatprep.subr.bf16.mxu1 %v986_v19  ;;  %v1018_v28 = vld [vmem:[%s1167_s2 + $0x20] ss:$8 sps:$4 sm:$0xff]   ;;  %v1031_v33 = vld [vmem:[%s1167_s2 + $0x34] ss:$8 sps:$4 sm:$0xff]   ;;  %v1037_v45 = vld [vmem:[%s1167_s2 + $0x30] ss:$8 sps:$4 sm:$0xff]  }
   0xa   :  { %v692_v20 = vadd.s32 4294967169, %v72_v17  ;;  %v76_v31 = vor.u32 8388608, %v75_v26  ;;  %v1043_v50 = vld [vmem:[%s1167_s2 + $0x44] ss:$8 sps:$4 sm:$0xff]   ;;  %v1051_v60 = vld [vmem:[%s1167_s2 + $0x40] ss:$8 sps:$4 sm:$0xff]  }
   0xb   :  { %737 = vmatpush3.bf16.msra.mxu0 %v921_v5  ;;  %v1060_v17 = vld [vmem:[%s1167_s2 + $0x54] ss:$8 sps:$4 sm:$0xff]   ;;  %vm70_vm7 = vcmp.lt.s32.totalorder %v956_v11, 0  ;;  %vm69_vm8 = vcmp.le.f32.partialorder %v68_v16, 0.7853982 }
   0xc   :  { %738 = vmatprep.subr.bf16.mxu0 %v927_v6  ;;  %v78_v23 = vadd.s32 1, %v692_v20  ;;  %499 = vmatpush1.bf16.msra.mxu1 %v997_v22  ;;  %v116_v54 = vshll.u32 %v76_v31, 8 }
   0xd   :  { %500 = vmatprep.subr.bf16.mxu1 %v1004_v24 }
   0xe   :  { %vm79_vm0 = vcmp.gt.s32.totalorder %v78_v23, 0 }
   0xf   :  { %739 = vmatpush3.bf16.msra.mxu0 %v933_v7  ;;  %v80_v27 = vsel %vm79_vm0, %v78_v23, 0 }
  0x10   :  { %740 = vmatprep.subr.bf16.mxu0 %v939_v8  ;;  %v82_v30 = vand.u32 31, %v80_v27  ;;  %v81_v32 = vshrl.u32 %v80_v27, 5  ;;  %501 = vmatpush1.bf16.msra.mxu1 %v1018_v28 }
  0x11   :  { %502 = vmatprep.subr.bf16.mxu1 %v1031_v33 }
  0x12   :  { %v83_v34 = vsub.s32 32, %v82_v30  ;;  %v85_v36 = vshll.u32 %v857_v35, %v82_v30  ;;  %v88_v38 = vshll.u32 %v858_v37, %v82_v30  ;;  %v91_v40 = vshll.u32 %v859_v39, %v82_v30 }
  0x13   :  { %741 = vmatpush3.bf16.msra.mxu0 %v945_v9  ;;  %v94_v42 = vshll.u32 %v860_v41, %v82_v30  ;;  %v97_v44 = vshll.u32 %v861_v43, %v82_v30  ;;  %vm100_vm1 = vcmp.lt.s32.totalorder %v81_v32, 1  ;;  %vm103_vm2 = vcmp.lt.s32.totalorder %v81_v32, 4 }
  0x14   :  { %742 = vmatprep.subr.bf16.mxu0 %v951_v10  ;;  %v84_v46 = vshrl.u32 %v857_v35, %v83_v34  ;;  %v86_v47 = vshrl.u32 %v858_v37, %v83_v34  ;;  %v89_v48 = vshrl.u32 %v859_v39, %v83_v34  ;;  %v92_v49 = vshrl.u32 %v860_v41, %v83_v34 }
  0x15   :  { %v95_v51 = vshrl.u32 %v861_v43, %v83_v34  ;;  %v98_v53 = vshrl.u32 %v862_v52, %v83_v34  ;;  %vm101_vm3 = vcmp.lt.s32.totalorder %v81_v32, 2  ;;  %vm102_vm4 = vcmp.lt.s32.totalorder %v81_v32, 3  ;;  %503 = vmatpush1.bf16.msra.mxu1 %v1037_v45  ;;  %v1081_v32 = vld [vmem:[%s1167_s2 + $0x64] ss:$8 sps:$4 sm:$0xff]  }
  0x16   :  { %v87_v55 = vor.u32 %v86_v47, %v85_v36  ;;  %v90_v56 = vor.u32 %v89_v48, %v88_v38  ;;  %v93_v57 = vor.u32 %v92_v49, %v91_v40  ;;  %504 = vmatprep.subr.bf16.mxu1 %v1043_v50  ;;  %v1069_v36 = vld [vmem:[%s1167_s2 + $0x50] ss:$8 sps:$4 sm:$0xff]  }
  0x17   :  { %743 = vmatpush3.bf16.msra.mxu0 %v968_v14  ;;  %v96_v58 = vor.u32 %v95_v51, %v94_v42  ;;  %v99_v59 = vor.u32 %v98_v53, %v97_v44  ;;  %v1087_v42 = vld [vmem:[%s1167_s2 + $0x60] ss:$8 sps:$4 sm:$0xff]  }
  0x18   :  { %744 = vmatprep.subr.bf16.mxu0 %v973_v15  ;;  %v104_v61 = vsel %vm100_vm1, %v84_v46, %v87_v55  ;;  %v105_v62 = vsel %vm103_vm2, %v93_v57, 2102212464  ;;  %v108_v63 = vsel %vm100_vm1, %v87_v55, %v90_v56  ;;  %v112_v12 = vsel %vm100_vm1, %v90_v56, %v93_v57 }
  0x19   :  { %v106_v20 = vsel %vm102_vm4, %v90_v56, %v105_v62  ;;  %v109_v23 = vsel %vm103_vm2, %v96_v58, 920167782  ;;  %v113_v26 = vsel %vm103_vm2, %v99_v59, 1326507024  ;;  %505 = vmatpush1.bf16.msra.mxu1 %v1051_v60 }
  0x1a   :  { %v110_v27 = vsel %vm102_vm4, %v93_v57, %v109_v23  ;;  %v114_v30 = vsel %vm102_vm4, %v96_v58, %v113_v26  ;;  %v107_v31 = vsel %vm101_vm3, %v104_v61, %v106_v20  ;;  %506 = vmatprep.subr.bf16.mxu1 %v1060_v17 }
  0x1b   :  { %745 = vmatpush3.bf16.msra.mxu0 %v991_v21  ;;  %v111_v34 = vsel %vm101_vm3, %v108_v63, %v110_v27  ;;  %v115_v35 = vsel %vm101_vm3, %v112_v12, %v114_v30  ;;  %v123_v41 = vmul.u32 %v116_v54, %v107_v31 }
  0x1c   :  { %746 = vmatprep.subr.bf16.mxu0 %v1010_v25  ;;  %v1071_v37 = vmul.u32.u64.low %v116_v54, %v115_v35  ;;  %v1072_v38 = vmul.u32.u64.high %v116_v54, %v115_v35, %v1071_v37  ;;  %v1074_v39 = vmul.u32.u64.low %v116_v54, %v111_v34  ;;  %v1075_v40 = vmul.u32.u64.high %v116_v54, %v111_v34, %v1074_v39 }
  0x1d   :  { %507 = vmatpush1.bf16.msra.mxu1 %v1069_v36 }
  0x1e   :  { %vm125_vm5 = vc.u32 %v1072_v38, %v1074_v39  ;;  %v126_v43 = vadd.s32 1, %v1075_v40  ;;  %508 = vmatprep.subr.bf16.mxu1 %v1081_v32  ;;  %v124_v56 = vadd.s32 %v1074_v39, %v1072_v38 }
  0x1f   :  { %747 = vmatpush3.bf16.msra.mxu0 %v1024_v29 }
  0x20   :  { %754 = vmatprep.subr.bf16.mxu0 %v892_v0  ;;  %v127_v44 = vsel %vm125_vm5, %v126_v43, %v1075_v40 }
  0x21   :  { %v128_v46 = vadd.s32 %v127_v44, %v123_v41  ;;  %509 = vmatpush1.bf16.msra.mxu1 %v1087_v42 }
  0x23   :  { %v129_v47 = vadd.s32 536870912, %v128_v46 }
  0x25   :  { %v130_v48 = vshrl.u32 %v129_v47, 30 }
  0x27   :  { %v131_v49 = vshll.u32 %v130_v48, 30  ;;  %v154_v30 = vsub.s32 4, %v130_v48 }
  0x29   :  { %v132_v51 = vsub.s32 %v128_v46, %v131_v49  ;;  %v155_v35 = vsel %vm70_vm7, %v154_v30, %v130_v48 }
  0x2a   :  { %v157_v39 = vsel %vm69_vm8, 0, %v155_v35 }
  0x2b   :  { %v134_v52 = vsub.s32 0, %v132_v51  ;;  %v265_v40 = vadd.s32 3, %v157_v39  ;;  %v161_v41 = vand.u32 3, %v157_v39 }
  0x2d   :  { %v693_v53 = vmin.u32 %v134_v52, %v132_v51  ;;  %v266_v43 = vand.u32 3, %v265_v40  ;;  %vm166_vm9 = vcmp.eq.s32.totalorder %v161_v41, 2  ;;  %vm163_vm11 = vcmp.eq.s32.totalorder %v161_v41, 0 }
  0x2e   :  { %vm162_vm13 = vcmp.lt.s32.totalorder %v161_v41, 2 }
  0x2f   :  { %v136_v54 = vclz %v693_v53  ;;  %vm271_vm10 = vcmp.eq.s32.totalorder %v266_v43, 2  ;;  %vm268_vm12 = vcmp.eq.s32.totalorder %v266_v43, 0  ;;  %vm267_vm14 = vcmp.lt.s32.totalorder %v266_v43, 2 }
  0x31   :  { %v694_v55 = vadd.s32 4294967294, %v136_v54 }
  0x33   :  { %vm695_vm6 = vcmp.lt.s32.totalorder %v694_v55, 0 }
  0x34   :  { %v139_v57 = vsel %vm695_vm6, 0, %v694_v55 }
  0x35   :  { %v140_v58 = vsub.s32 32, %v139_v57  ;;  %v141_v59 = vshll.u32 %v132_v51, %v139_v57  ;;  %v144_v61 = vsub.s32 4294967266, %v139_v57  ;;  %v1103_v51 = vld [vmem:[%s1168_s0] sm:$0xff] }
  0x37   :  { %v142_v62 = vshrl.u32 %v124_v56, %v140_v58  ;;  %v145_v63 = vadd.s32 127, %v144_v61 }
  0x39   :  { %v143_v12 = vor.u32 %v142_v62, %v141_v59  ;;  %v146_v20 = vshll.u32 %v145_v63, 23  ;;  %v848_v63 = vld [vmem:[%s1167_s2 + $0x70] ss:$8 sps:$4 sm:$0xff]  }
  0x3b   :  { %v147_v23 = vor.u32 4788187, %v146_v20  ;;  %v150_v26 = vcvt.s32.f32 %v143_v12  ;;  %v863_v12 = vmov 0  }
  0x3c   :  { %528 = vmatprep.mubr.bf16.mxu1 %v863_v12 }
  0x3d   :  { %v148_v27 = vand.u32 2147483647, %v147_v23 }
  0x3f   :  { %v151_v31 = vmul.f32 %v150_v26, %v148_v27 }
  0x41   :  { %v152_v34 = vxor.u32 2147483648, %v151_v31 }
  0x43   :  { %v153_v37 = vsel %vm70_vm7, %v152_v34, %v151_v31 }
  0x44   :  { %v156_v38 = vsel %vm69_vm8, %v956_v11, %v153_v37  ;;  %v846_v11 = vld [vmem:[%s1167_s2 + $0x74] ss:$8 sps:$4 sm:$0xff]  }
  0x45   :  { %849 = vcosq.f32 %v156_v38  ;;  %510 = vmatprep.subr.bf16.mxu1 %v846_v11 }
  0x46   :  { %851 = vsinq.f32 %v156_v38  ;;  %511 = vmatpush1.bf16.msra.mxu1 %v848_v63 }
  0x47   :  { %592 = vmatprep.subr.bf16.mxu1 %v962_v13 }
  0x4f   :  { %v850_v44 = vpop.eup %849 }
  0x50   :  { %v852_v46 = vpop.eup %851  ;;  %v167_v47 = vxor.u32 2147483648, %v850_v44 }
  0x51   :  { %v164_v16 = vxor.u32 2147483648, %v852_v46 }
  0x52   :  { %v168_v48 = vsel %vm166_vm9, %v167_v47, %v852_v46  ;;  %v273_v49 = vsel %vm271_vm10, %v167_v47, %v852_v46 }
  0x53   :  { %v165_v52 = vsel %vm163_vm11, %v850_v44, %v164_v16  ;;  %v270_v53 = vsel %vm268_vm12, %v850_v44, %v164_v16 }
  0x54   :  { %v169_v54 = vsel %vm162_vm13, %v165_v52, %v168_v48  ;;  %v274_v55 = vsel %vm267_vm14, %v270_v53, %v273_v49 }
  0x55   :  { %v170_v56 = vsel %vm160_vm15, nan, %v169_v54  ;;  %v275_v57 = vsel %vm160_vm15, nan, %v274_v55 }
  0x56   :  { %v276_v58 = vmul.f32 %v275_v57, %v1103_v51  ;;  %v171_v59 = vmul.f32 %v170_v56, %v1103_v51 }
  0x58   :  { %v278_v61 = vpack.c.bf16 %v276_v58, %v276_v58  ;;  %v277_v62 = vpack.c.bf16 %v171_v59, %v171_v59 }
  0x5a   :  { %407 = vmatprep.mubr.bf16.mxu0 %v278_v61 }
  0x5b   :  { %408 = vmatmul.mubr.bf16.vlgmr.msra.gmra.mrb[0].mxu0 %v277_v62 }
  0x5c   :  { %755 = vmatpush3.bf16.msra.mxu0 %v897_v1 }
  0x5d   :  { %756 = vmatprep.subr.bf16.mxu0 %v903_v2 }
  0x60   :  { %757 = vmatpush3.bf16.msra.mxu0 %v909_v3 }
  0x61   :  { %758 = vmatprep.subr.bf16.mxu0 %v915_v4 }
  0x64   :  { %759 = vmatpush3.bf16.msra.mxu0 %v921_v5 }
  0x65   :  { %760 = vmatprep.subr.bf16.mxu0 %v927_v6 }
  0x68   :  { %761 = vmatpush3.bf16.msra.mxu0 %v933_v7 }
  0x69   :  { %762 = vmatprep.subr.bf16.mxu0 %v939_v8 }
  0x6c   :  { %763 = vmatpush3.bf16.msra.mxu0 %v945_v9 }
  0x6d   :  { %764 = vmatprep.subr.bf16.mxu0 %v951_v10 }
  0x70   :  { %765 = vmatpush3.bf16.msra.mxu0 %v968_v14 }
  0x71   :  { %766 = vmatprep.subr.bf16.mxu0 %v973_v15 }
  0x74   :  { %767 = vmatpush3.bf16.msra.mxu0 %v991_v21 }
  0x75   :  { %768 = vmatprep.subr.bf16.mxu0 %v1010_v25 }
  0x78   :  { %769 = vmatpush3.bf16.msra.mxu0 %v1024_v29 }
  0x79   :  { %776 = vmatprep.subr.bf16.mxu0 %v892_v0 }
 0x12e   :  { %v748_v20 = vpop.f32.mrb[0].mxu0 }
 0x12f   :  { %v749_v23 = vpop.f32.mrb[1].mxu0 }
 0x130   :  { %v750_v26 = vadd.f32 %v749_v23, %v748_v20  ;;  %v751_v27 = vpop.f32.mrb[2].mxu0 }
 0x131   :  { %v752_v30 = vpop.f32.mrb[3].mxu0 }
 0x132   :  { %v415_v0 = vpack.c.bf16 %v750_v26, %v750_v26 }
 0x134   :  { %529 = vmatmul.mubr.bf16.vlgmr.msra.gmra.mrb[0].mxu1 %v415_v0 }
 0x135   :  { %593 = vmatpush1.bf16.msra.mxu1 %v981_v18  ;;  %624 = vmatprep.mubr.bf16.mxu1 %v863_v12 }
 0x136   :  { %594 = vmatprep.subr.bf16.mxu1 %v986_v19 }
 0x139   :  { %595 = vmatpush1.bf16.msra.mxu1 %v997_v22 }
 0x13a   :  { %596 = vmatprep.subr.bf16.mxu1 %v1004_v24 }
 0x13d   :  { %597 = vmatpush1.bf16.msra.mxu1 %v1018_v28 }
 0x13e   :  { %598 = vmatprep.subr.bf16.mxu1 %v1031_v33 }
 0x141   :  { %599 = vmatpush1.bf16.msra.mxu1 %v1037_v45 }
 0x142   :  { %600 = vmatprep.subr.bf16.mxu1 %v1043_v50 }
 0x145   :  { %601 = vmatpush1.bf16.msra.mxu1 %v1051_v60 }
 0x146   :  { %602 = vmatprep.subr.bf16.mxu1 %v1060_v17 }
 0x149   :  { %603 = vmatpush1.bf16.msra.mxu1 %v1069_v36 }
 0x14a   :  { %604 = vmatprep.subr.bf16.mxu1 %v1081_v32 }
 0x14d   :  { %605 = vmatpush1.bf16.msra.mxu1 %v1087_v42 }
 0x14e   :  { %606 = vmatprep.subr.bf16.mxu1 %v846_v11 }
 0x151   :  { %607 = vmatpush1.bf16.msra.mxu1 %v848_v63 }
 0x207   :  { %v530_v13 = vpop.f32.mrb[0].mxu1 }
 0x208   :  { %v537_v18 = vmul.f32 %v530_v13, %v530_v13  ;;  %v532_v19 = vpop.f32.mrb[1].mxu1 }
 0x209   :  { %v538_v22 = vmul.f32 %v532_v19, %v532_v19  ;;  %v534_v24 = vpop.f32.mrb[2].mxu1 }
 0x20a   :  { %v535_v28 = vpop.f32.mrb[3].mxu1 }
 0x20b   :  { %v539_v33 = vadd.f32 %v538_v22, %v537_v18 }
 0x20d   :  { %vm540_vm0 = vcmp.gt.f32.partialorder %v539_v33, 1.1754944e-38 }
 0x20e   :  { %v541_v45 = vsel %vm540_vm0, %v539_v33, 1.0 }
 0x20f   :  { %853 = vrsqrt.f32 %v541_v45 }
 0x219   :  { %v854_v50 = vpop.eup %853 }
 0x21a   :  { %v543_v60 = vmul.f32 %v854_v50, %v530_v13  ;;  %v544_v17 = vmul.f32 %v854_v50, %v532_v19 }
 0x21c   :  { %v545_v36 = vsel %vm540_vm0, %v543_v60, 1.0  ;;  %v546_v31 = vsel %vm540_vm0, %v544_v17, 0.0 }
 0x21d   :  { %v548_v32 = vmul.f32 %v546_v31, %v1103_v51  ;;  %v547_v42 = vmul.f32 %v545_v36, %v1103_v51 }
 0x21f   :  { %v550_v34 = vpack.c.bf16 %v548_v32, %v548_v32  ;;  %v549_v35 = vpack.c.bf16 %v547_v42, %v547_v42 }
 0x221   :  { %583 = vmatprep.mubr.bf16.mxu0 %v550_v34 }
 0x222   :  { %584 = vmatmul.mubr.bf16.vlgmr.msra.gmra.mrb[4].mxu0 %v549_v35 }
 0x223   :  { %777 = vmatpush3.bf16.msra.mxu0 %v897_v1 }
 0x224   :  { %778 = vmatprep.subr.bf16.mxu0 %v903_v2 }
 0x227   :  { %779 = vmatpush3.bf16.msra.mxu0 %v909_v3 }
 0x228   :  { %780 = vmatprep.subr.bf16.mxu0 %v915_v4 }
 0x22b   :  { %781 = vmatpush3.bf16.msra.mxu0 %v921_v5 }
 0x22c   :  { %782 = vmatprep.subr.bf16.mxu0 %v927_v6 }
 0x22f   :  { %783 = vmatpush3.bf16.msra.mxu0 %v933_v7 }
 0x230   :  { %784 = vmatprep.subr.bf16.mxu0 %v939_v8 }
 0x233   :  { %785 = vmatpush3.bf16.msra.mxu0 %v945_v9 }
 0x234   :  { %786 = vmatprep.subr.bf16.mxu0 %v951_v10 }
 0x237   :  { %787 = vmatpush3.bf16.msra.mxu0 %v968_v14 }
 0x238   :  { %788 = vmatprep.subr.bf16.mxu0 %v973_v15 }
 0x23b   :  { %789 = vmatpush3.bf16.msra.mxu0 %v991_v21 }
 0x23c   :  { %790 = vmatprep.subr.bf16.mxu0 %v1010_v25 }
 0x23f   :  { %791 = vmatpush3.bf16.msra.mxu0 %v1024_v29 }
 0x2f5   :  { %v770_v1 = vpop.f32.mrb[4].mxu0 }
 0x2f6   :  { %v771_v2 = vpop.f32.mrb[5].mxu0 }
 0x2f7   :  { %v772_v3 = vadd.f32 %v771_v2, %v770_v1  ;;  %v773_v4 = vpop.f32.mrb[6].mxu0 }
 0x2f8   :  { %v774_v5 = vpop.f32.mrb[7].mxu0 }
 0x2f9   :  { %v591_v6 = vpack.c.bf16 %v772_v3, %v772_v3 }
 0x2fb   :  { %625 = vmatmul.mubr.bf16.vlgmr.msra.gmra.mrb[4].mxu1 %v591_v6 }
 0x3ce   :  { %v626_v7 = vpop.f32.mrb[4].mxu1 }
 0x3cf   :  { %v633_v8 = vmul.f32 %v626_v7, %v626_v7  ;;  %v628_v9 = vpop.f32.mrb[5].mxu1 }
 0x3d0   :  { %v634_v10 = vmul.f32 %v628_v9, %v628_v9  ;;  %v630_v14 = vpop.f32.mrb[6].mxu1 }
 0x3d1   :  { %v631_v37 = vpop.f32.mrb[7].mxu1 }
 0x3d2   :  { %v635_v15 = vadd.f32 %v634_v10, %v633_v8 }
 0x3d4   :  { %vm636_vm1 = vcmp.gt.f32.partialorder %v635_v15, 1.1754944e-38 }
 0x3d5   :  { %v637_v21 = vsel %vm636_vm1, %v635_v15, 1.0 }
 0x3d6   :  { %855 = vrsqrt.f32 %v637_v21 }
 0x3e0   :  { %v856_v25 = vpop.eup %855 }
 0x3e1   :  { %v639_v38 = vmul.f32 %v856_v25, %v626_v7  ;;  %v640_v29 = vmul.f32 %v856_v25, %v628_v9 }
 0x3e3   :  { %v641_v39 = vsel %vm636_vm1, %v639_v38, 1.0  ;;  %v642_v40 = vsel %vm636_vm1, %v640_v29, 0.0 }
 0x3e4   :  { %v644_v41 = vmul.f32 %v642_v40, %v1103_v51  ;;  %v643_v43 = vmul.f32 %v641_v39, %v1103_v51 }
 0x3e6   :  { %v646_v44 = vpack.c.bf16 %v644_v41, %v644_v41  ;;  %v645_v46 = vpack.c.bf16 %v643_v43, %v643_v43 }
 0x3e8   :  { %679 = vmatprep.mubr.bf16.mxu0 %v646_v44 }
 0x3e9   :  { %680 = vmatmul.mubr.bf16.vlgmr.msra.gmra.mrb[8].mxu0 %v645_v46 }
 0x4bc   :  { %v792_v47 = vpop.f32.mrb[8].mxu0 }
 0x4bd   :  { %v793_v16 = vpop.f32.mrb[9].mxu0 }
 0x4be   :  { %v794_v48 = vadd.f32 %v793_v16, %v792_v47  ;;  %v795_v49 = vpop.f32.mrb[10].mxu0 }
 0x4bf   :  { %v796_v52 = vpop.f32.mrb[11].mxu0 }
 0x4c0   :  { %687 = vst [vmem:[%s1169_s4] sm:$0xff] %v794_v48 }

</bundles_post_ra>
